<compile_context>
chip_gen: v7x
topology: tpu7x:2x2x1
jax: 0.10.0
libtpu: 0.0.40
codegen_flags: <defaults>
</compile_context>

<pallas_src>
import jax
import jax.numpy as jnp
from jax.experimental import pallas as pl
from jax.experimental.pallas import tpu as pltpu

K = 5          # conv kernel size
C_IN = 6       # input feature maps (S2 output)
N_MAPS = 16    # output feature maps (C3)

SIZE_OF_MAP = [3, 3, 3, 3, 3, 3, 4, 4, 4, 4, 4, 4, 4, 4, 4, 6]
INPUTS_TO_EACH = [
    [0, 1, 2], [1, 2, 3], [2, 3, 4], [3, 4, 5], [4, 5, 0], [5, 0, 1],
    [0, 1, 2, 3], [1, 2, 3, 4], [2, 3, 4, 5], [3, 4, 5, 0], [4, 5, 0, 1],
    [5, 0, 1, 2], [0, 1, 3, 4], [1, 2, 4, 5], [2, 3, 5, 0],
    [0, 1, 2, 3, 4, 5],
]


def _c3_matmul_kernel(w_ref, p_ref, o_ref):
    # w_ref: (O, Kp)       VMEM  (flattened weights | bias column | zero pad)
    # p_ref: (Kp, Mp)      VMEM  (im2col patches | ones row | zero pad), lane-dense
    # o_ref: (O, Mp)       VMEM  (lane-dense, unmasked stores)
    o_ref[...] = jnp.dot(w_ref[...], p_ref[...],
                         preferred_element_type=jnp.float32)


def c3_forward(x, w_dense, bias):
    """x: (N, 6, H, W) f32; w_dense: (16, 6, 5, 5); bias: (16,). Returns NCHW output."""
    n, c_in, h, w = x.shape
    o_chan = w_dense.shape[0]
    oh, ow = h - K + 1, w - K + 1
    ckk = c_in * K * K
    m = n * oh * ow

    # Padded sizes: contraction to a multiple of 8 (sublane), columns to a
    # multiple of 128 (lane-dense output / unmasked vst).  Zero padding is exact.
    kp = ((ckk + 1 + 7) // 8) * 8
    m_pad = ((m + 127) // 128) * 128

    x = x.astype(jnp.float32)

    # ---- Wrapper-side layout glue (no arithmetic; fused into the kernel's
    # ---- input DMA via allow_input_fusion) --------------------------------
    # im2col: (C*K*K, N*OH*OW), row index = c*K*K + kh*K + kw.
    cols = jnp.stack(
        [x[:, :, kh:kh + oh, kw:kw + ow] for kh in range(K) for kw in range(K)],
        axis=2)                                                  # (N, C, K*K, OH, OW)
    patches = cols.transpose(1, 2, 0, 3, 4).reshape(ckk, m)      # (150, m)
    patches_aug = jnp.concatenate(
        [patches, jnp.ones((1, m), jnp.float32)], axis=0)        # (151, m)
    patches_aug = jnp.pad(
        patches_aug, ((0, kp - (ckk + 1)), (0, m_pad - m)))      # (152, 256)

    # Weights: (O, C*K*K) with matching c*K*K + kh*K + kw ordering; bias folded
    # in as an extra column so the kernel is a single matmul (no epilogue add).
    w_flat = w_dense.astype(jnp.float32).reshape(o_chan, ckk)    # (16, 150)
    w_aug = jnp.concatenate(
        [w_flat, bias.astype(jnp.float32)[:, None]], axis=1)     # (16, 151)
    w_aug = jnp.pad(w_aug, ((0, 0), (0, kp - (ckk + 1))))        # (16, 152)

    # ---- Pallas kernel: one MXU matmul, no grid, whole arrays in VMEM -----
    out_pad = pl.pallas_call(
        _c3_matmul_kernel,
        out_shape=jax.ShapeDtypeStruct((o_chan, m_pad), jnp.float32),
        in_specs=[
            pl.BlockSpec(memory_space=pltpu.MemorySpace.VMEM),
            pl.BlockSpec(memory_space=pltpu.MemorySpace.VMEM),
        ],
        out_specs=pl.BlockSpec(memory_space=pltpu.MemorySpace.VMEM),
        compiler_params=pltpu.CompilerParams(
            # Let XLA fuse the (pure-layout) producers of both operands into
            # the kernel's input DMA instead of bouncing them through HBM.
            allow_input_fusion=[True, True],
        ),
        cost_estimate=pl.CostEstimate(
            flops=2 * o_chan * kp * m_pad,
            transcendentals=0,
            bytes_accessed=4 * (o_chan * kp + kp * m_pad + o_chan * m_pad),
        ),
    )(w_aug, patches_aug)                                        # (16, 256)

    # Slice off the zero-padded columns, back to NCHW (pure layout plumbing).
    out_flat = out_pad[:, :m]                                    # (16, m)
    return out_flat.reshape(o_chan, n, oh, ow).transpose(1, 0, 2, 3)


def init_params(key):
    """Deterministic init matching torch.rand(...)*0.192 - 0.096 (uniform[-0.096, 0.096))."""
    w_dense = jnp.zeros((N_MAPS, C_IN, K, K), jnp.float32)
    for i, chans in enumerate(INPUTS_TO_EACH):
        key, sub = jax.random.split(key)
        wi = jax.random.uniform(sub, (len(chans), K, K), jnp.float32,
                                minval=-0.096, maxval=0.096)
        w_dense = w_dense.at[i, jnp.asarray(chans)].set(wi)
    key, sub = jax.random.split(key)
    bias = jax.random.uniform(sub, (N_MAPS,), jnp.float32,
                              minval=-0.096, maxval=0.096)
    return w_dense, bias


if __name__ == "__main__":
    key = jax.random.PRNGKey(0)
    key, kx, kp_key = jax.random.split(key, 3)

    # LeNet C3 input: 6 feature maps of 14x14 (S2 output); small batch of 2.
    x = jax.random.normal(kx, (2, C_IN, 14, 14), jnp.float32)
    w_dense, bias = init_params(kp_key)

    out = jax.block_until_ready(jax.jit(c3_forward)(x, w_dense, bias))

    # Pure-JAX reference: dense conv is mathematically identical to the 16
    # partially-connected convs because unused channels have exactly-zero weights.
    ref = jax.lax.conv_general_dilated(
        x, w_dense, window_strides=(1, 1), padding="VALID",
        dimension_numbers=("NCHW", "OIHW", "NCHW"),
    ) + bias[None, :, None, None]

    assert out.shape == (2, N_MAPS, 10, 10), out.shape
    assert bool(jnp.allclose(out, ref, atol=1e-4, rtol=1e-4)), float(
        jnp.max(jnp.abs(out - ref)))
    print("KERNEL_OK")
</pallas_src>

<mosaic_0001>
module attributes {stable_mosaic.version = 11 : i64} {
  func.func @_c3_matmul_kernel(%arg0: memref<16x152xf32, #tpu.memory_space<vmem>>, %arg1: memref<152x256xf32, #tpu.memory_space<vmem>>, %arg2: memref<16x256xf32, #tpu.memory_space<vmem>>) attributes {dimension_semantics = [], scalar_prefetch = 0 : i64, scratch_operands = 0 : i64, tpu.core_type = #tpu.core_type<tc>} {
    %c0 = arith.constant 0 : index
    %c0_0 = arith.constant 0 : index
    %0 = vector.load %arg0[%c0, %c0_0] : memref<16x152xf32, #tpu.memory_space<vmem>>, vector<16x152xf32>
    %c0_1 = arith.constant 0 : index
    %c0_2 = arith.constant 0 : index
    %1 = vector.load %arg1[%c0_1, %c0_2] : memref<152x256xf32, #tpu.memory_space<vmem>>, vector<152x256xf32>
    %cst = arith.constant dense<0.000000e+00> : vector<16x256xf32>
    %2 = tpu.matmul %0, %1, %cst {dimension_numbers = #tpu.dot_dimension_numbers<[1], [0], [0], [1], [0, 0, 1, 1], [], []>} : vector<16x152xf32>, vector<152x256xf32>, vector<16x256xf32> -> vector<16x256xf32>
    %c0_3 = arith.constant 0 : index
    %c0_4 = arith.constant 0 : index
    %3 = vector.load %arg2[%c0_3, %c0_4] : memref<16x256xf32, #tpu.memory_space<vmem>>, vector<16x256xf32>
    tpu.vector_store %arg2[%c0_3, %c0_4], %2 {strides = array<i32>} : memref<16x256xf32, #tpu.memory_space<vmem>>, vector<16x256xf32>,
    return
  }
}

</mosaic_0001>

<bundles_post_ra>
// kernel: c3_forward.2
= control target key start
LH: loop header
LB: loop body
LE: loop exit
PB: predicated region body
PF: predicated region fallthrough
CT: control target
= control target key end

     0   :  { %v64_v5 = vlaneseq  ;;  %s2157_s25 = smov 22   ;;  %s2938_s0 = inlined_call_operand.vmem [shape: f32[150,200], index: 0, kind: input, shape index: {}]   ;;  %s2939_s1 = inlined_call_operand.<no memory space> [shape: f32[], index: 1, kind: input, shape index: {}]   ;;  %s2940_s2 = inlined_call_operand.<no memory space> [shape: s32[], index: 2, kind: input, shape index: {}]   ;;  %s2941_s3 = inlined_call_operand.<no memory space> [shape: f32[], index: 3, kind: input, shape index: {}]   ;;  %s2942_s4 = inlined_call_operand.<no memory space> [shape: s32[], index: 4, kind: input, shape index: {}]   ;;  %s2943_s5 = inlined_call_operand.vmem [shape: f32[16,1], index: 5, kind: input, shape index: {}]   ;;  %s2944_s6 = inlined_call_operand.<no memory space> [shape: f32[], index: 6, kind: input, shape index: {}]   ;;  %s2945_s7 = inlined_call_operand.vmem [shape: f32[16,150], index: 7, kind: input, shape index: {}]   ;;  %s2946_s8 = inlined_call_operand.vmem [shape: f32[16,256], index: 8, kind: output, shape index: {}]  }
   0x1   :  { %v2206_v0 = vstv %s2944_s6  ;;  %v2211_v1 = vstv %s2941_s3  ;;  %v2216_v2 = vstv %s2942_s4  ;;  %v2221_v3 = vstv %s2939_s1 }
   0x2   :  { %v18_v4 = vstv %s2940_s2  ;;  %v2226_v6 = vand.u32 127, %v64_v5  ;;  %v2228_v7 = vshrl.u32 %v64_v5, 7  ;;  %v209_v8 = vld [vmem:[%s2938_s0] sm:$0xff]  ;;  %v1982_v13 = vld [vmem:[%s2943_s5 + $0x8] sm:$0xff]  ;;  %v1993_v16 = vld [vmem:[%s2938_s0 + $0x18] sm:$0xff] }
   0x3   :  { %v57_v9 = vld [vmem:[%s2943_s5] sm:$0xff]  ;;  %v1987_v14 = vld [vmem:[%s2938_s0 + $0x8] sm:$0xff]  ;;  %v1990_v22 = vld [vmem:[%s2938_s0 + $0x10] sm:$0xff] }
   0x4   :  { %v89_v10 = vadd.s32 256, %v2226_v6  ;;  %vm94_vm0 = vcmp.lt.s32.totalorder %v2226_v6, 106  ;;  %v2239_v11 = vadd.s32 128, %v2226_v6  ;;  %vm2242_vm1 = vcmp.lt.s32.totalorder %v2226_v6, %v18_v4  ;;  %v1999_v27 = vld [vmem:[%s2938_s0 + $0x28] sm:$0xff]  ;;  %v2005_v33 = vld [vmem:[%s2938_s0 + $0x38] sm:$0xff]  ;;  %v1996_v38 = vld [vmem:[%s2938_s0 + $0x20] sm:$0xff] }
   0x5   :  { %vm226_vm2 = vcmp.lt.s32.totalorder %v2228_v7, %v2216_v2  ;;  %v308_v15 = vadd.s32 8, %v2228_v7  ;;  %v394_v17 = vadd.s32 16, %v2228_v7  ;;  %v480_v18 = vadd.s32 24, %v2228_v7  ;;  %v2002_v39 = vld [vmem:[%s2938_s0 + $0x30] sm:$0xff]  ;;  %v2011_v43 = vld [vmem:[%s2938_s0 + $0x48] sm:$0xff]  ;;  %v2017_v48 = vld [vmem:[%s2938_s0 + $0x58] sm:$0xff] }
   0x6   :  { %vm90_vm3 = vcmp.lt.s32.totalorder %v89_v10, 257  ;;  %vm260_vm4 = vcmp.lt.s32.totalorder %v2239_v11, 200  ;;  %vm2262_vm5 = vcmp.lt.s32.totalorder %v2239_v11, %v18_v4  ;;  %vm2271_vm6 = vmand %vm226_vm2, %vm2242_vm1  ;;  %v241_v21 = vsel %vm226_vm2, %v209_v8, %v2211_v1  ;;  %v2008_v59 = vld [vmem:[%s2938_s0 + $0x40] sm:$0xff]  ;;  %v2014_v63 = vld [vmem:[%s2938_s0 + $0x50] sm:$0xff] }
   0x7   :  { %v91_v23 = vsel %vm90_vm3, %v57_v9, %v2206_v0  ;;  %v171_v24 = vsel %vm90_vm3, %v1982_v13, %v2206_v0  ;;  %v261_v25 = vsel %vm260_vm4, %v1987_v14, %v2221_v3  ;;  %vm2292_vm7 = vmand %vm226_vm2, %vm2262_vm5  ;;  %vm311_vm8 = vcmp.lt.s32.totalorder %v308_v15, %v2216_v2  ;;  %v2023_v9 = vld [vmem:[%s2938_s0 + $0x68] sm:$0xff]  ;;  %v2029_v10 = vld [vmem:[%s2938_s0 + $0x78] sm:$0xff] }
   0x8   :  { %v95_v28 = vsel %vm94_vm0, %v91_v23, %v2206_v0  ;;  %v175_v29 = vsel %vm94_vm0, %v171_v24, %v2206_v0  ;;  %v283_v30 = vsel %vm226_vm2, %v261_v25, %v2211_v1  ;;  %v347_v31 = vsel %vm260_vm4, %v1993_v16, %v2221_v3  ;;  %vm2315_vm9 = vmand %vm311_vm8, %vm2262_vm5  ;;  %v2020_v13 = vld [vmem:[%s2938_s0 + $0x60] sm:$0xff]  ;;  %v2026_v23 = vld [vmem:[%s2938_s0 + $0x70] sm:$0xff] }
   0x9   :  { %96 = vrot.lane.b32.xlu0 %v95_v28, %s2157_s25  ;;  %v288_v34 = vsel %vm2292_vm7, %v283_v30, %v2211_v1  ;;  %v369_v35 = vsel %vm311_vm8, %v347_v31, %v2211_v1  ;;  %v246_v36 = vsel %vm2271_vm6, %v241_v21, %v2211_v1  ;;  %vm1991_vm10 = vmand %vm311_vm8, %vm2242_vm1  ;;  %v326_v37 = vsel %vm311_vm8, %v1990_v22, %v2211_v1  ;;  %v2038_v51 = vld [vmem:[%s2938_s0 + $0x90] sm:$0xff]  ;;  %v2059_v15 = vld [vmem:[%s2938_s0 + $0xc8] sm:$0xff] }
   0xa   :  { %v374_v40 = vsel %vm2315_vm9, %v369_v35, %v2211_v1  ;;  %v331_v41 = vsel %vm1991_vm10, %v326_v37, %v2211_v1  ;;  %vm397_vm11 = vcmp.lt.s32.totalorder %v394_v17, %v2216_v2  ;;  %v433_v42 = vsel %vm260_vm4, %v1999_v27, %v2221_v3  ;;  %v1981_v12 = vld [vmem:[%s2945_s7 + $0x8] sm:$0xff] }
   0xb   :  { %v2100_v44 = vpack.c.bf16 %v374_v40, %v288_v34  ;;  %v2102_v45 = vpack.c.bf16 %v331_v41, %v246_v36  ;;  %vm2353_vm12 = vmand %vm397_vm11, %vm2262_vm5  ;;  %v455_v47 = vsel %vm397_vm11, %v433_v42, %v2211_v1  ;;  %vm483_vm13 = vcmp.lt.s32.totalorder %v480_v18, %v2216_v2 }
   0xc   :  { %v460_v49 = vsel %vm2353_vm12, %v455_v47, %v2211_v1  ;;  %v519_v50 = vsel %vm260_vm4, %v2005_v33, %v2221_v3  ;;  %vm2374_vm14 = vmand %vm483_vm13, %vm2262_vm5  ;;  %v412_v52 = vsel %vm397_vm11, %v1996_v38, %v2211_v1  ;;  %v498_v53 = vsel %vm483_vm13, %v2002_v39, %v2211_v1  ;;  %v2041_v33 = vld [vmem:[%s2938_s0 + $0x98] sm:$0xff] }
   0xd   :  { %176 = vrot.lane.b32.xlu0 %v175_v29, %s2157_s25  ;;  %2101 = vmatprep.subr.bf16.mxu0 %v2100_v44  ;;  %v541_v54 = vsel %vm483_vm13, %v519_v50, %v2211_v1  ;;  %vm2391_vm15 = vmand %vm397_vm11, %vm2242_vm1  ;;  %v566_v56 = vadd.s32 32, %v2228_v7  ;;  %v605_v57 = vsel %vm260_vm4, %v2011_v43, %v2221_v3  ;;  %v652_v58 = vadd.s32 40, %v2228_v7  ;;  %v2035_v29 = vld [vmem:[%s2938_s0 + $0x88] sm:$0xff]  ;;  %v2032_v43 = vld [vmem:[%s2938_s0 + $0x80] sm:$0xff] }
   0xe   :  { %2136 = vmatprep.subr.bf16.mxu1 %v2100_v44  ;;  %2103 = vmatpush1.bf16.msra.mxu0 %v2102_v45  ;;  %v546_v60 = vsel %vm2374_vm14, %v541_v54, %v2211_v1  ;;  %v417_v61 = vsel %vm2391_vm15, %v412_v52, %v2211_v1  ;;  %vm2003_vm0 = vmand %vm483_vm13, %vm2242_vm1  ;;  %v691_v62 = vsel %vm260_vm4, %v2017_v48, %v2221_v3  ;;  %v738_v4 = vadd.s32 48, %v2228_v7  ;;  %v2047_v52 = vld [vmem:[%s2938_s0 + $0xa8] sm:$0xff] }
   0xf   :  { %2146 = vmatpush1.bf16.msra.mxu1 %v2102_v45  ;;  %v2104_v5 = vpack.c.bf16 %v546_v60, %v460_v49  ;;  %v503_v8 = vsel %vm2003_vm0, %v498_v53, %v2211_v1  ;;  %vm569_vm2 = vcmp.lt.s32.totalorder %v566_v56, %v2216_v2  ;;  %vm655_vm3 = vcmp.lt.s32.totalorder %v652_v58, %v2216_v2 }
  0x10   :  { %v2106_v14 = vpack.c.bf16 %v503_v8, %v417_v61  ;;  %vm2436_vm6 = vmand %vm569_vm2, %vm2262_vm5  ;;  %v627_v16 = vsel %vm569_vm2, %v605_v57, %v2211_v1  ;;  %v713_v17 = vsel %vm655_vm3, %v691_v62, %v2211_v1  ;;  %v584_v18 = vsel %vm569_vm2, %v2008_v59, %v2211_v1  ;;  %v2053_v57 = vld [vmem:[%s2938_s0 + $0xb8] sm:$0xff]  ;;  %v2044_v61 = vld [vmem:[%s2938_s0 + $0xa0] sm:$0xff] }
  0x11   :  { %2105 = vmatprep.subr.bf16.mxu0 %v2104_v5  ;;  %2137 = vmatprep.subr.bf16.mxu1 %v2104_v5  ;;  %v632_v20 = vsel %vm2436_vm6, %v627_v16, %v2211_v1  ;;  %vm2018_vm7 = vmand %vm655_vm3, %vm2262_vm5  ;;  %v670_v21 = vsel %vm655_vm3, %v2014_v63, %v2211_v1  ;;  %vm741_vm8 = vcmp.lt.s32.totalorder %v738_v4, %v2216_v2  ;;  %v824_v22 = vadd.s32 56, %v2228_v7  ;;  %v2050_v62 = vld [vmem:[%s2938_s0 + $0xb0] sm:$0xff] }
  0x12   :  { %2107 = vmatpush1.bf16.msra.mxu0 %v2106_v14  ;;  %v718_v24 = vsel %vm2018_vm7, %v713_v17, %v2211_v1  ;;  %vm2469_vm9 = vmand %vm569_vm2, %vm2242_vm1  ;;  %v777_v26 = vsel %vm260_vm4, %v2023_v9, %v2221_v3  ;;  %v863_v27 = vsel %vm260_vm4, %v2029_v10, %v2221_v3  ;;  %v756_v28 = vsel %vm741_vm8, %v2020_v13, %v2211_v1 }
  0x13   :  { %2147 = vmatpush1.bf16.msra.mxu1 %v2106_v14  ;;  %v2108_v30 = vpack.c.bf16 %v718_v24, %v632_v20  ;;  %v589_v31 = vsel %vm2469_vm9, %v584_v18, %v2211_v1  ;;  %vm2015_vm10 = vmand %vm655_vm3, %vm2242_vm1  ;;  %v799_v32 = vsel %vm741_vm8, %v777_v26, %v2211_v1  ;;  %vm827_vm11 = vcmp.lt.s32.totalorder %v824_v22, %v2216_v2  ;;  %v2086_v18 = vld [vmem:[%s2938_s0 + $0x110] sm:$0xff] }
  0x14   :  { %v675_v34 = vsel %vm2015_vm10, %v670_v21, %v2211_v1  ;;  %vm2504_vm12 = vmand %vm741_vm8, %vm2262_vm5  ;;  %v885_v36 = vsel %vm827_vm11, %v863_v27, %v2211_v1  ;;  %v842_v37 = vsel %vm827_vm11, %v2026_v23, %v2211_v1  ;;  %v910_v38 = vadd.s32 64, %v2228_v7  ;;  %v2065_v23 = vld [vmem:[%s2938_s0 + $0xd8] sm:$0xff]  ;;  %v2056_v27 = vld [vmem:[%s2938_s0 + $0xc0] sm:$0xff] }
  0x15   :  { %2109 = vmatprep.subr.bf16.mxu0 %v2108_v30  ;;  %2138 = vmatprep.subr.bf16.mxu1 %v2108_v30  ;;  %v2110_v39 = vpack.c.bf16 %v675_v34, %v589_v31  ;;  %v804_v40 = vsel %vm2504_vm12, %v799_v32, %v2211_v1  ;;  %vm2030_vm13 = vmand %vm827_vm11, %vm2262_vm5  ;;  %v949_v41 = vsel %vm260_vm4, %v2035_v29, %v2221_v3  ;;  %v996_v42 = vadd.s32 72, %v2228_v7 }
  0x16   :  { %v890_v44 = vsel %vm2030_vm13, %v885_v36, %v2211_v1  ;;  %vm2534_vm14 = vmand %vm741_vm8, %vm2242_vm1  ;;  %vm913_vm15 = vcmp.lt.s32.totalorder %v910_v38, %v2216_v2  ;;  %v1035_v46 = vsel %vm260_vm4, %v2041_v33, %v2221_v3  ;;  %v1082_v47 = vadd.s32 80, %v2228_v7  ;;  %v2071_v36 = vld [vmem:[%s2938_s0 + $0xe8] sm:$0xff] }
  0x17   :  { %2111 = vmatpush1.bf16.msra.mxu0 %v2110_v39  ;;  %2148 = vmatpush1.bf16.msra.mxu1 %v2110_v39  ;;  %v2112_v48 = vpack.c.bf16 %v890_v44, %v804_v40  ;;  %v761_v49 = vsel %vm2534_vm14, %v756_v28, %v2211_v1  ;;  %vm2027_vm0 = vmand %vm827_vm11, %vm2242_vm1  ;;  %v971_v50 = vsel %vm913_vm15, %v949_v41, %v2211_v1  ;;  %v1168_v53 = vadd.s32 88, %v2228_v7  ;;  %v2062_v28 = vld [vmem:[%s2938_s0 + $0xd0] sm:$0xff] }
  0x18   :  { %v847_v54 = vsel %vm2027_vm0, %v842_v37, %v2211_v1  ;;  %vm2565_vm2 = vmand %vm913_vm15, %vm2262_vm5  ;;  %vm999_vm3 = vcmp.lt.s32.totalorder %v996_v42, %v2216_v2  ;;  %v928_v56 = vsel %vm913_vm15, %v2032_v43, %v2211_v1  ;;  %vm1085_vm6 = vcmp.lt.s32.totalorder %v1082_v47, %v2216_v2  ;;  %v2077_v43 = vld [vmem:[%s2938_s0 + $0xf8] sm:$0xff]  ;;  %v2068_v47 = vld [vmem:[%s2938_s0 + $0xe0] sm:$0xff] }
  0x19   :  { %2113 = vmatprep.subr.bf16.mxu0 %v2112_v48  ;;  %2139 = vmatprep.subr.bf16.mxu1 %v2112_v48  ;;  %v2114_v58 = vpack.c.bf16 %v847_v54, %v761_v49  ;;  %v976_v59 = vsel %vm2565_vm2, %v971_v50, %v2211_v1  ;;  %vm2042_vm7 = vmand %vm999_vm3, %vm2262_vm5  ;;  %v1057_v60 = vsel %vm999_vm3, %v1035_v46, %v2211_v1  ;;  %v1254_v63 = vadd.s32 96, %v2228_v7  ;;  %v2074_v48 = vld [vmem:[%s2938_s0 + $0xf0] sm:$0xff] }
  0x1a   :  { %v1062_v4 = vsel %vm2042_vm7, %v1057_v60, %v2211_v1  ;;  %vm2599_vm8 = vmand %vm913_vm15, %vm2242_vm1  ;;  %v1014_v8 = vsel %vm999_vm3, %v2038_v51, %v2211_v1  ;;  %v1121_v9 = vsel %vm260_vm4, %v2047_v52, %v2221_v3  ;;  %vm1171_vm9 = vcmp.lt.s32.totalorder %v1168_v53, %v2216_v2 }
  0x1b   :  { %2115 = vmatpush1.bf16.msra.mxu0 %v2114_v58  ;;  %2149 = vmatpush1.bf16.msra.mxu1 %v2114_v58  ;;  %v2116_v10 = vpack.c.bf16 %v1062_v4, %v976_v59  ;;  %v933_v13 = vsel %vm2599_vm8, %v928_v56, %v2211_v1  ;;  %vm2039_vm10 = vmand %vm999_vm3, %vm2242_vm1  ;;  %v1143_v14 = vsel %vm1085_vm6, %v1121_v9, %v2211_v1  ;;  %v1340_v16 = vadd.s32 104, %v2228_v7  ;;  %v2083_v56 = vld [vmem:[%s2938_s0 + $0x108] sm:$0xff]  ;;  %v2080_v9 = vld [vmem:[%s2938_s0 + $0x100] sm:$0xff] }
  0x1c   :  { %v1019_v17 = vsel %vm2039_vm10, %v1014_v8, %v2211_v1  ;;  %vm2629_vm11 = vmand %vm1085_vm6, %vm2262_vm5  ;;  %v1207_v20 = vsel %vm260_vm4, %v2053_v57, %v2221_v3  ;;  %v1100_v21 = vsel %vm1085_vm6, %v2044_v61, %v2211_v1  ;;  %v1186_v22 = vsel %vm1171_vm9, %v2050_v62, %v2211_v1  ;;  %v2089_v8 = vld [vmem:[%s2938_s0 + $0x118] sm:$0xff] }
  0x1d   :  { %2117 = vmatprep.subr.bf16.mxu0 %v2116_v10  ;;  %2140 = vmatprep.subr.bf16.mxu1 %v2116_v10  ;;  %v2118_v24 = vpack.c.bf16 %v1019_v17, %v933_v13  ;;  %v1148_v25 = vsel %vm2629_vm11, %v1143_v14, %v2211_v1  ;;  %vm2054_vm12 = vmand %vm1171_vm9, %vm2262_vm5  ;;  %v1229_v26 = vsel %vm1171_vm9, %v1207_v20, %v2211_v1  ;;  %v1426_v29 = vadd.s32 112, %v2228_v7 }
  0x1e   :  { %v1234_v30 = vsel %vm2054_vm12, %v1229_v26, %v2211_v1  ;;  %vm2667_vm13 = vmand %vm1085_vm6, %vm2242_vm1  ;;  %vm1257_vm14 = vcmp.lt.s32.totalorder %v1254_v63, %v2216_v2  ;;  %v1293_v32 = vsel %vm260_vm4, %v2059_v15, %v2221_v3  ;;  %vm1343_vm15 = vcmp.lt.s32.totalorder %v1340_v16, %v2216_v2 }
  0x1f   :  { %2119 = vmatpush1.bf16.msra.mxu0 %v2118_v24  ;;  %2150 = vmatpush1.bf16.msra.mxu1 %v2118_v24  ;;  %v2120_v33 = vpack.c.bf16 %v1234_v30, %v1148_v25  ;;  %v1105_v34 = vsel %vm2667_vm13, %v1100_v21, %v2211_v1  ;;  %vm2051_vm0 = vmand %vm1171_vm9, %vm2242_vm1  ;;  %v1315_v35 = vsel %vm1257_vm14, %v1293_v32, %v2211_v1  ;;  %v1512_v37 = vadd.s32 120, %v2228_v7 }
  0x20   :  { %v1191_v38 = vsel %vm2051_vm0, %v1186_v22, %v2211_v1  ;;  %vm2695_vm2 = vmand %vm1257_vm14, %vm2262_vm5  ;;  %v1379_v40 = vsel %vm260_vm4, %v2065_v23, %v2221_v3  ;;  %v1272_v41 = vsel %vm1257_vm14, %v2056_v27, %v2211_v1  ;;  %v1358_v42 = vsel %vm1343_vm15, %v2062_v28, %v2211_v1  ;;  %v2095_v27 = vld [vmem:[%s2938_s0 + $0x128] sm:$0xff]  ;;  %v2092_v28 = vld [vmem:[%s2938_s0 + $0x120] sm:$0xff] }
  0x21   :  { %2121 = vmatprep.subr.bf16.mxu0 %v2120_v33  ;;  %2141 = vmatprep.subr.bf16.mxu1 %v2120_v33  ;;  %v2122_v44 = vpack.c.bf16 %v1191_v38, %v1105_v34  ;;  %v1320_v45 = vsel %vm2695_vm2, %v1315_v35, %v2211_v1  ;;  %vm2066_vm3 = vmand %vm1343_vm15, %vm2262_vm5  ;;  %v1401_v46 = vsel %vm1343_vm15, %v1379_v40, %v2211_v1  ;;  %v1598_v49 = vadd.s32 128, %v2228_v7  ;;  %v58_v40 = vld [vmem:[%s2945_s7] sm:$0xff] }
  0x22   :  { %v1406_v50 = vsel %vm2066_vm3, %v1401_v46, %v2211_v1  ;;  %vm2733_vm6 = vmand %vm1257_vm14, %vm2242_vm1  ;;  %vm1429_vm7 = vcmp.lt.s32.totalorder %v1426_v29, %v2216_v2  ;;  %v1465_v52 = vsel %vm260_vm4, %v2071_v36, %v2221_v3  ;;  %vm1515_vm8 = vcmp.lt.s32.totalorder %v1512_v37, %v2216_v2 }
  0x23   :  { %2123 = vmatpush1.bf16.msra.mxu0 %v2122_v44  ;;  %2151 = vmatpush1.bf16.msra.mxu1 %v2122_v44  ;;  %v2124_v53 = vpack.c.bf16 %v1406_v50, %v1320_v45  ;;  %v1277_v54 = vsel %vm2733_vm6, %v1272_v41, %v2211_v1  ;;  %vm2063_vm9 = vmand %vm1343_vm15, %vm2242_vm1  ;;  %v1487_v55 = vsel %vm1429_vm7, %v1465_v52, %v2211_v1  ;;  %v1684_v57 = vadd.s32 136, %v2228_v7 }
  0x24   :  { %v1363_v58 = vsel %vm2063_vm9, %v1358_v42, %v2211_v1  ;;  %vm2761_vm10 = vmand %vm1429_vm7, %vm2262_vm5  ;;  %v1551_v60 = vsel %vm260_vm4, %v2077_v43, %v2221_v3  ;;  %v1444_v61 = vsel %vm1429_vm7, %v2068_v47, %v2211_v1  ;;  %v1530_v62 = vsel %vm1515_vm8, %v2074_v48, %v2211_v1  ;;  %v1984_v42 = vld [vmem:[%s2945_s7 + $0x18] sm:$0xff] }
  0x25   :  { %2125 = vmatprep.subr.bf16.mxu0 %v2124_v53  ;;  %2142 = vmatprep.subr.bf16.mxu1 %v2124_v53  ;;  %v2126_v63 = vpack.c.bf16 %v1363_v58, %v1277_v54  ;;  %v1492_v4 = vsel %vm2761_vm10, %v1487_v55, %v2211_v1  ;;  %vm2078_vm11 = vmand %vm1515_vm8, %vm2262_vm5  ;;  %v1573_v5 = vsel %vm1515_vm8, %v1551_v60, %v2211_v1  ;;  %v1759_v20 = vadd.s32 144, %v2228_v7 }
  0x26   :  { %v1578_v10 = vsel %vm2078_vm11, %v1573_v5, %v2211_v1  ;;  %vm2795_vm12 = vmand %vm1429_vm7, %vm2242_vm1  ;;  %vm1601_vm13 = vcmp.lt.s32.totalorder %v1598_v49, %v2216_v2  ;;  %v1637_v14 = vsel %vm260_vm4, %v2083_v56, %v2221_v3  ;;  %vm1687_vm0 = vcmp.lt.s32.totalorder %v1684_v57, %v2216_v2 }
  0x27   :  { %2127 = vmatpush1.bf16.msra.mxu0 %v2126_v63  ;;  %2152 = vmatpush1.bf16.msra.mxu1 %v2126_v63  ;;  %v2128_v15 = vpack.c.bf16 %v1578_v10, %v1492_v4  ;;  %v1449_v16 = vsel %vm2795_vm12, %v1444_v61, %v2211_v1  ;;  %vm2075_vm14 = vmand %vm1515_vm8, %vm2242_vm1  ;;  %v1659_v17 = vsel %vm1601_vm13, %v1637_v14, %v2211_v1  ;;  %vm1760_vm3 = vcmp.lt.s32.totalorder %v1759_v20, 150 }
  0x28   :  { %v1535_v21 = vsel %vm2075_vm14, %v1530_v62, %v2211_v1  ;;  %vm2822_vm15 = vmand %vm1601_vm13, %vm2262_vm5  ;;  %v1723_v23 = vsel %vm260_vm4, %v2089_v8, %v2221_v3  ;;  %v1616_v7 = vsel %vm1601_vm13, %v2080_v9, %v2211_v1  ;;  %v1702_v30 = vsel %vm1687_vm0, %v2086_v18, %v2211_v1 }
  0x29   :  { %2129 = vmatprep.subr.bf16.mxu0 %v2128_v15  ;;  %2143 = vmatprep.subr.bf16.mxu1 %v2128_v15  ;;  %v2130_v24 = vpack.c.bf16 %v1535_v21, %v1449_v16  ;;  %v1664_v25 = vsel %vm2822_vm15, %v1659_v17, %v2211_v1  ;;  %vm2090_vm2 = vmand %vm1687_vm0, %vm2262_vm5  ;;  %v1745_v26 = vsel %vm1687_vm0, %v1723_v23, %v2211_v1  ;;  %vm1883_vm11 = vcmask 195584  }
  0x2a   :  { %v1750_v29 = vsel %vm2090_vm2, %v1745_v26, %v2211_v1  ;;  %vm2081_vm6 = vmand %vm1601_vm13, %vm2242_vm1  ;;  %vm1773_vm7 = vcmp.lt.s32.totalorder %v1759_v20, %v2216_v2  ;;  %v1804_v34 = vsel %vm1760_vm3, %v2095_v27, %v2221_v3  ;;  %v1761_v35 = vsel %vm1760_vm3, %v2092_v28, %v2221_v3 }
  0x2b   :  { %2131 = vmatpush1.bf16.msra.mxu0 %v2130_v24  ;;  %2153 = vmatpush1.bf16.msra.mxu1 %v2130_v24  ;;  %v2132_v31 = vpack.c.bf16 %v1750_v29, %v1664_v25  ;;  %v1621_v32 = vsel %vm2081_vm6, %v1616_v7, %v2211_v1  ;;  %vm2087_vm8 = vmand %vm1687_vm0, %vm2242_vm1  ;;  %v1809_v37 = vsel %vm260_vm4, %v1804_v34, %v2221_v3 }
  0x2c   :  { %v1707_v33 = vsel %vm2087_vm8, %v1702_v30, %v2211_v1  ;;  %vm2096_vm9 = vmand %vm1773_vm7, %vm2262_vm5  ;;  %v1788_v19 = vsel %vm1773_vm7, %v1761_v35, %v2211_v1  ;;  %v1831_v38 = vsel %vm1773_vm7, %v1809_v37, %v2211_v1  ;;  %vm70_vm4 = vcmp.lt.s32.totalorder %v2226_v6, %v2216_v2  ;;  %v1983_v6 = vld [vmem:[%s2945_s7 + $0x10] sm:$0xff] }
  0x2d   :  { %2133 = vmatprep.subr.bf16.mxu0 %v2132_v31  ;;  %2144 = vmatprep.subr.bf16.mxu1 %v2132_v31  ;;  %v2134_v36 = vpack.c.bf16 %v1707_v33, %v1621_v32  ;;  %vm2093_vm10 = vmand %vm1773_vm7, %vm2242_vm1  ;;  %v1836_v39 = vsel %vm2096_vm9, %v1831_v38, %v2211_v1  ;;  %vm103_vm1 = vcmp.lt.s32.totalorder %v2239_v11, 150  ;;  %vm111_vm5 = vcmp.lt.s32.totalorder %v2239_v11, %v2216_v2 }
  0x2e   :  { %v1793_v3 = vsel %vm2093_vm10, %v1788_v19, %v2211_v1  ;;  %v104_v41 = vsel %vm103_vm1, %v1981_v12, %v2206_v0  ;;  %v75_v43 = vsel %vm70_vm4, %v58_v40, %v2211_v1  ;;  %v79_v44 = vsel %vm70_vm4, %v2206_v0, %v2211_v1 }
  0x2f   :  { %2135 = vmatpush1.bf16.msra.mxu0 %v2134_v36  ;;  %2154 = vmatpush1.bf16.msra.mxu1 %v2134_v36  ;;  %v116_v45 = vsel %vm111_vm5, %v104_v41, %v2211_v1  ;;  %v184_v47 = vsel %vm103_vm1, %v1984_v42, %v2206_v0  ;;  %v83_v49 = vmax.f32 %v75_v43, %v79_v44 }
  0x30   :  { %1926 = vmatprep.subr.mxu0 %v1836_v39  ;;  %2145 = vmatprep.subr.mxu1 %v1836_v39  ;;  %v153_v51 = vsel %vm70_vm4, %v1983_v6, %v2211_v1  ;;  %v196_v52 = vsel %vm111_vm5, %v184_v47, %v2211_v1 }
  0x31   :  { %v161_v54 = vmax.f32 %v153_v51, %v79_v44 }
  0x33   :  { %1927 = vmatpush1.msra.mxu0 %v1793_v3  ;;  %2155 = vmatpush1.msra.mxu1 %v1793_v3 }
  0x7b   :  { %v97_v46 = vpop.permute.xlu0 %96 }
  0x7c   :  { %v120_v48 = vsel %vm111_vm5, %v97_v46, %v2211_v1 }
  0x7d   :  { %v124_v50 = vmax.f32 %v116_v45, %v120_v48 }
  0x7f   :  { %2098 = vmatprep.mubr.msk.f32.mxu0 %vm1883_vm11, %v124_v50  ;;  %v177_v53 = vpop.permute.xlu0 %176 }
  0x80   :  { %v200_v0 = vsel %vm111_vm5, %v177_v53, %v2211_v1  ;;  %1955 = vmatmul.mubr.f32.vlgmr.msra.gmra.mrb[0].mxu0 %v83_v49 }
  0x81   :  { %v204_v55 = vmax.f32 %v196_v52, %v200_v0 }
  0x83   :  { %2099 = vmatprep.mubr.msk.f32.mxu1 %vm1883_vm11, %v204_v55 }
  0x84   :  { %1961 = vmatmul.mubr.f32.vlgmr.msra.gmra.mrb[0].mxu1 %v161_v54 }
 0x153   :  { %v1956_v56 = vpop.f32.mrb[0].mxu0 }
 0x154   :  { %1967 = vst [vmem:[%s2946_s8] sm:$0xff] %v1956_v56  ;;  %v1958_v57 = vpop.f32.mrb[1].mxu0 }
 0x155   :  { %1968 = vst [vmem:[%s2946_s8 + $0x8] sm:$0xff] %v1958_v57 }
 0x157   :  { %v1962_v58 = vpop.f32.mrb[0].mxu1 }
 0x158   :  { %1969 = vst [vmem:[%s2946_s8 + $0x10] sm:$0xff] %v1962_v58  ;;  %v1964_v1 = vpop.f32.mrb[1].mxu1 }
 0x159   :  { %1970 = vst [vmem:[%s2946_s8 + $0x18] sm:$0xff] %v1964_v1 }

</bundles_post_ra>
